<compile_context>
chip_gen: v7x
topology: tpu7x:2x2x1
jax: 0.10.0
libtpu: 0.0.40
codegen_flags: <defaults>
</compile_context>

<pallas_src>
import functools

import jax
import jax.numpy as jnp
from jax import lax
from jax.experimental import pallas as pl
from jax.experimental.pallas import tpu as pltpu

_MAX_TILE_V = 16384      # hard cap on the vertex tile


def _round_up(x, m):
    return -(-x // m) * m


def _vmem_limit_bytes():
    """~3/4 of physical VMEM: 96 MiB on v5e/v6e (128 MiB), 48 MiB on v7x (64 MiB)."""
    try:
        cap = int(pltpu.get_tpu_info().vmem_capacity_bytes)
    except Exception:        # info unavailable -> assume the smallest (v7x, 64 MiB)
        cap = 64 << 20
    return max(32 << 20, min(3 * cap // 4, 96 << 20))


def _choose_tile_v(V, K, C, et_dtype, ft_dtype, vmem_budget):
    """Largest vertex tile whose double-buffered streamed blocks fit `vmem_budget`.

    Budgets with padded VMEM layouts: the (tv, C) feat block is lane-padded to
    >=128 lanes and the (K, tv) evecs block is sublane-padded to >=8 rows.
    """
    c_lanes = max(_round_up(C, 128), 128)
    k_rows = max(_round_up(K, 8), 8)
    per_vertex = (2 * c_lanes * jnp.dtype(ft_dtype).itemsize      # feat, 2 buffers
                  + 2 * k_rows * jnp.dtype(et_dtype).itemsize)    # evecs, 2 buffers
    tv = min(int(vmem_budget // per_vertex), _MAX_TILE_V)
    if tv >= V:
        return V                           # single tile: block dims == array dims
    return max(128, (tv // 128) * 128)     # lane-aligned (last dim of evecs block)


# ---------------------------------------------------------------------------
# Pallas kernel: resident-accumulator projection  [K,V] @ [V,C]
# ---------------------------------------------------------------------------
def _proj_kernel(et_ref, ft_ref, o_ref, *, tile_v, n_valid_v, tiles_per_split,
                 needs_mask):
    p = pl.program_id(0)
    v = pl.program_id(1)

    @pl.when(v == 0)
    def _():
        o_ref[...] = jnp.zeros_like(o_ref)

    et = et_ref[...]                       # [K, tile_v], native dtype
    ft = ft_ref[...]                       # [tile_v, C], native dtype
    if et.dtype not in (jnp.float32, jnp.bfloat16):
        et = et.astype(jnp.float32)        # cast in VMEM, never via an HBM copy
    if ft.dtype not in (jnp.float32, jnp.bfloat16):
        ft = ft.astype(jnp.float32)

    if needs_mask:
        # Ragged tail: zero BOTH operands past the true vertex count so stale
        # VMEM contents of the partially-filled last block can never reach the
        # accumulator (0 * garbage could still be NaN).
        valid = n_valid_v - (p * tiles_per_split + v) * tile_v
        et = jnp.where(lax.broadcasted_iota(jnp.int32, et.shape, 1) < valid,
                       et, jnp.zeros_like(et))
        ft = jnp.where(lax.broadcasted_iota(jnp.int32, ft.shape, 0) < valid,
                       ft, jnp.zeros_like(ft))

    o_ref[...] += jnp.dot(et, ft, preferred_element_type=jnp.float32)


def pallas_project(evecs_trans, feat, *, tile_v=None):
    """[K, V] @ [V, C] -> [K, C] (f32 accumulation), V tiled as a reduction."""
    K, V = evecs_trans.shape
    Vf, C = feat.shape
    assert V == Vf, (V, Vf)

    vmem_limit = _vmem_limit_bytes()
    if tile_v is None:
        tile_v = _choose_tile_v(V, K, C, evecs_trans.dtype, feat.dtype,
                                vmem_budget=vmem_limit // 2)
    tile_v = max(1, min(int(tile_v), V))
    if tile_v < V and tile_v % 128 != 0:
        # last dim of the evecs block must be a multiple of 128 or the full V
        tile_v = min(max(128, (tile_v // 128) * 128), V)
    n_tiles = -(-V // tile_v)

    # Size-2 "parallel" split of the reduction -> both v7x TensorCores stream
    # HBM (partials summed below); a plain short loop on 1-TC v5e/v6e chips.
    n_split = 2 if (n_tiles >= 4 and n_tiles % 2 == 0) else 1
    tiles_per_split = n_tiles // n_split
    needs_mask = (n_tiles * tile_v != V)

    kernel = functools.partial(
        _proj_kernel, tile_v=tile_v, n_valid_v=V,
        tiles_per_split=tiles_per_split, needs_mask=needs_mask)

    partial_out = pl.pallas_call(
        kernel,
        grid=(n_split, tiles_per_split),
        in_specs=[
            pl.BlockSpec((K, tile_v), lambda p, v: (0, p * tiles_per_split + v)),
            pl.BlockSpec((tile_v, C), lambda p, v: (p * tiles_per_split + v, 0)),
        ],
        out_specs=pl.BlockSpec((None, K, C), lambda p, v: (p, 0, 0)),
        out_shape=jax.ShapeDtypeStruct((n_split, K, C), jnp.float32),
        compiler_params=pltpu.CompilerParams(
            dimension_semantics=("parallel", "arbitrary"),
            vmem_limit_bytes=vmem_limit),
    )(evecs_trans, feat)
    return partial_out.sum(axis=0)


# ---------------------------------------------------------------------------
# Module re-implementation
# ---------------------------------------------------------------------------
def _squeeze_f32(x):
    return jnp.squeeze(x).astype(jnp.float32)


class ExpandedStandardFMNet:
    def __init__(self, lmbda=0.001, bidirectional=False, adapt_feature=True,
                 adapt_mask=True, tile_v=None):
        self.lmbda = float(lmbda)
        self.bidirectional = bidirectional
        self.adapt_feature = adapt_feature
        self.adapt_mask = adapt_mask
        self.tile_v = tile_v          # optional override (testing / tuning)

    # --- K x K algebra via Kronecker-Gram identities (plain-JAX glue) -------
    def _solve_fmap(self, A, B0, lx, ly, sMx, sMy):
        k = A.shape[0]
        eye_k = jnp.eye(k, dtype=jnp.float32)
        Ik = sMy if self.adapt_feature else eye_k

        GA = A @ A.T                        # A A^T
        GIk = Ik.T @ Ik                     # Ik^T Ik
        RHS = (GIk @ B0) @ A.T              # Ik^T B A^T   (B = Ik @ B0)

        first = jnp.kron(GA, GIk)           # == (A^T (x) Ik)^T (A^T (x) Ik)
        if self.adapt_mask:
            # TODO(synk): K x K matrix inverse has no Pallas primitive; plain JAX.
            mx_inv = jnp.linalg.inv(sMx)
            W = lx[:, None] * mx_inv        # Lx @ inv(sqrtMk_x)
            L1 = W.T @ W
            L2 = mx_inv.T @ W
            L3 = mx_inv.T @ mx_inv
            GM = sMy.T @ sMy
            rt2 = GM * ly[None, :] + ly[:, None] * GM
            rt3 = (ly[:, None] * GM) * ly[None, :]
            second = jnp.kron(L1, GM) - jnp.kron(L2, rt2) + jnp.kron(L3, rt3)
        else:
            d = ((lx[None, :] - ly[:, None]) ** 2).T.reshape(-1)
            second = jnp.diag(d)

        op = first + self.lmbda * second
        rhs = RHS.T.reshape(k * k, 1)       # column-major vec(Ik^T B A^T)
        # TODO(synk): dense LU solve has no Pallas TPU primitive; plain JAX.
        C = jnp.linalg.solve(op, rhs)
        return C.reshape(k, k).T[None]      # [1, K, K]

    def compute_functional_map(self, feat_x, feat_y, evals_x, evals_y,
                               evecs_trans_x, evecs_trans_y, sqrtMk_x, sqrtMk_y):
        A = pallas_project(jnp.squeeze(evecs_trans_x), jnp.squeeze(feat_x),
                           tile_v=self.tile_v)
        B0 = pallas_project(jnp.squeeze(evecs_trans_y), jnp.squeeze(feat_y),
                            tile_v=self.tile_v)
        return self._solve_fmap(A, B0,
                                _squeeze_f32(evals_x), _squeeze_f32(evals_y),
                                _squeeze_f32(sqrtMk_x), _squeeze_f32(sqrtMk_y))

    def __call__(self, feat_x, feat_y, evals_x, evals_y,
                 evecs_trans_x, evecs_trans_y, sqrtMk_x, sqrtMk_y):
        lx, ly = _squeeze_f32(evals_x), _squeeze_f32(evals_y)
        sMx, sMy = _squeeze_f32(sqrtMk_x), _squeeze_f32(sqrtMk_y)

        # The projections are the only O(V) work; compute once, reuse both ways.
        A_x = pallas_project(jnp.squeeze(evecs_trans_x), jnp.squeeze(feat_x),
                             tile_v=self.tile_v)
        A_y = pallas_project(jnp.squeeze(evecs_trans_y), jnp.squeeze(feat_y),
                             tile_v=self.tile_v)

        Cxy = self._solve_fmap(A_x, A_y, lx, ly, sMx, sMy)
        Cyx = (self._solve_fmap(A_y, A_x, ly, lx, sMy, sMx)
               if self.bidirectional else None)
        return Cxy, Cyx


# ---------------------------------------------------------------------------
# Pure-JAX reference (mirrors the torch code 1:1, incl. flags) for checking
# ---------------------------------------------------------------------------
def reference_fmap(feat_x, feat_y, evals_x, evals_y, etx, ety, sMx, sMy,
                   lmbda, adapt_feature=True, adapt_mask=True):
    feat_x = jnp.squeeze(feat_x).astype(jnp.float32)
    feat_y = jnp.squeeze(feat_y).astype(jnp.float32)
    sMx = jnp.squeeze(sMx).astype(jnp.float32)
    sMy = jnp.squeeze(sMy).astype(jnp.float32)
    etx = jnp.squeeze(etx).astype(jnp.float32)
    ety = jnp.squeeze(ety).astype(jnp.float32)
    evals_x = jnp.squeeze(evals_x).astype(jnp.float32)
    evals_y = jnp.squeeze(evals_y).astype(jnp.float32)
    A = etx @ feat_x
    B = ety @ feat_y
    if adapt_feature:
        B = sMy @ B
    k, m = A.shape
    vec_B = B.T.reshape(m * k, 1)
    Ik = sMy if adapt_feature else jnp.eye(k, dtype=jnp.float32)
    At_Ik = jnp.kron(A.T, Ik)
    first = At_Ik.T @ At_Ik
    if adapt_mask:
        inv_sMx = jnp.linalg.inv(sMx)
        lxd = jnp.diag(evals_x)
        lyd = jnp.diag(evals_y)
        Delta = jnp.kron(lxd @ inv_sMx, sMy) - jnp.kron(inv_sMx, sMy @ lyd)
        second = Delta.T @ Delta
    else:
        Dm = (evals_x[None, :] - evals_y[:, None]) ** 2
        second = jnp.diag(Dm.T.reshape(-1))
    rhs = At_Ik.T @ vec_B
    C = jnp.linalg.solve(first + lmbda * second, rhs)
    return C.reshape(k, k).T[None]


# ---------------------------------------------------------------------------
if __name__ == "__main__":
    Bsz, K, C = 1, 8, 32
    root = jax.random.PRNGKey(0)

    def make_inputs(key, Vx, Vy):
        k1, k2, k3, k4, k5, k6, k7, k8 = jax.random.split(key, 8)
        feat_x = jax.random.normal(k1, (Bsz, Vx, C), jnp.float32)
        feat_y = jax.random.normal(k2, (Bsz, Vy, C), jnp.float32)
        evals_x = jnp.sort(jax.random.uniform(k3, (Bsz, K), jnp.float32)) * 2.0
        evals_y = jnp.sort(jax.random.uniform(k4, (Bsz, K), jnp.float32)) * 2.0
        etx = jax.random.normal(k5, (Bsz, K, Vx), jnp.float32) * 0.3
        ety = jax.random.normal(k6, (Bsz, K, Vy), jnp.float32) * 0.3
        sMx = (jnp.eye(K, dtype=jnp.float32)[None]
               + 0.05 * jax.random.normal(k7, (Bsz, K, K), jnp.float32))
        sMy = (jnp.eye(K, dtype=jnp.float32)[None]
               + 0.05 * jax.random.normal(k8, (Bsz, K, K), jnp.float32))
        return (feat_x, feat_y, evals_x, evals_y, etx, ety, sMx, sMy)

    def check(name, got, want):
        got = jax.block_until_ready(got)
        want = jax.block_until_ready(want)
        err = float(jnp.max(jnp.abs(got - want)))
        assert bool(jnp.allclose(got, want, rtol=1e-2, atol=1e-2)), \
            f"{name}: max |diff| = {err}"

    kt = jax.random.split(root, 6)

    # 0) direct check of the tiled / split / masked-tail projection path
    ke, kf = jax.random.split(kt[0])
    et_big = jax.random.normal(ke, (K, 700), jnp.float32) * 0.3
    ft_big = jax.random.normal(kf, (700, C), jnp.float32)
    check("proj_tiled", pallas_project(et_big, ft_big, tile_v=128),
          et_big @ ft_big)

    # 1) default config (adapt_feature=True, adapt_mask=True, unidirectional)
    inp = make_inputs(kt[1], 16, 16)
    net = ExpandedStandardFMNet()
    Cxy, Cyx = net(*inp)
    assert Cxy.shape == (1, K, K) and Cyx is None
    check("default", Cxy,
          reference_fmap(*inp, lmbda=net.lmbda, adapt_feature=True, adapt_mask=True))

    # 2) adapt_mask=False, bidirectional=True (projections reused both ways)
    inp = make_inputs(kt[2], 16, 16)
    net = ExpandedStandardFMNet(adapt_mask=False, bidirectional=True)
    Cxy, Cyx = net(*inp)
    check("no_mask_xy", Cxy,
          reference_fmap(*inp, lmbda=net.lmbda, adapt_feature=True, adapt_mask=False))
    fx, fy, ex, ey, etx, ety, sx, sy = inp
    check("no_mask_yx", Cyx,
          reference_fmap(fy, fx, ey, ex, ety, etx, sy, sx,
                         lmbda=net.lmbda, adapt_feature=True, adapt_mask=False))

    # 3) adapt_feature=False
    inp = make_inputs(kt[3], 16, 16)
    net = ExpandedStandardFMNet(adapt_feature=False)
    Cxy, _ = net(*inp)
    check("no_feat", Cxy,
          reference_fmap(*inp, lmbda=net.lmbda, adapt_feature=False, adapt_mask=True))

    # 4) larger V, auto tile (single-tile path, no pad / no cast copies)
    inp = make_inputs(kt[4], 700, 650)
    net = ExpandedStandardFMNet()
    Cxy, _ = net(*inp)
    check("auto_tile_V", Cxy,
          reference_fmap(*inp, lmbda=net.lmbda, adapt_feature=True, adapt_mask=True))

    # 5) forced small tile: multi-tile grid, two-way split, masked ragged tail
    net = ExpandedStandardFMNet(tile_v=128)
    Cxy, _ = net(*inp)
    check("tiled_masked_V", Cxy,
          reference_fmap(*inp, lmbda=net.lmbda, adapt_feature=True, adapt_mask=True))

    print("KERNEL_OK")
</pallas_src>

<mosaic_0001>
module attributes {stable_mosaic.version = 11 : i64} {
  func.func @_proj_kernel(%arg0: i32, %arg1: i32, %arg2: memref<8x128xf32, #tpu.memory_space<vmem>>, %arg3: memref<128x32xf32, #tpu.memory_space<vmem>>, %arg4: memref<1x8x32xf32, #tpu.memory_space<vmem>>) attributes {dimension_semantics = [#tpu.dimension_semantics<parallel>, #tpu.dimension_semantics<arbitrary>], iteration_bounds = array<i64: 2, 3>, scalar_prefetch = 0 : i64, scratch_operands = 0 : i64, tpu.core_type = #tpu.core_type<tc>, window_params = [{transform_indices = @transform_0, window_bounds = array<i64: 8, 128>}, {transform_indices = @transform_1, window_bounds = array<i64: 128, 32>}, {transform_indices = @transform_2, window_bounds = array<i64: 1, 8, 32>}]} {
    %c0_i32 = arith.constant 0 : i32
    %0 = arith.cmpi eq, %arg1, %c0_i32 : i32
    %1 = arith.extui %0 : i1 to i32
    %c0_i32_0 = arith.constant 0 : i32
    %2 = arith.cmpi ne, %1, %c0_i32_0 : i32
    scf.if %2 {
      %cst_12 = arith.constant 0.000000e+00 : f32
      %26 = vector.broadcast %cst_12 : f32 to vector<8x32xf32>
      %c0_13 = arith.constant 0 : index
      %c0_14 = arith.constant 0 : index
      %c0_15 = arith.constant 0 : index
      %27 = vector.load %arg4[%c0_13, %c0_14, %c0_15] : memref<1x8x32xf32, #tpu.memory_space<vmem>>, vector<1x8x32xf32>
      %28 = vector.shape_cast %27 : vector<1x8x32xf32> to vector<8x32xf32>
      %29 = vector.shape_cast %26 : vector<8x32xf32> to vector<1x8x32xf32>
      tpu.vector_store %arg4[%c0_13, %c0_14, %c0_15], %29 {strides = array<i32>} : memref<1x8x32xf32, #tpu.memory_space<vmem>>, vector<1x8x32xf32>,
    } else {
    }
    %c0 = arith.constant 0 : index
    %c0_1 = arith.constant 0 : index
    %3 = vector.load %arg2[%c0, %c0_1] : memref<8x128xf32, #tpu.memory_space<vmem>>, vector<8x128xf32>
    %c0_2 = arith.constant 0 : index
    %c0_3 = arith.constant 0 : index
    %4 = vector.load %arg3[%c0_2, %c0_3] : memref<128x32xf32, #tpu.memory_space<vmem>>, vector<128x32xf32>
    %c3_i32 = arith.constant 3 : i32
    %5 = arith.muli %arg0, %c3_i32 : i32
    %6 = arith.addi %5, %arg1 : i32
    %c128_i32 = arith.constant 128 : i32
    %7 = arith.muli %6, %c128_i32 : i32
    %c700_i32 = arith.constant 700 : i32
    %8 = arith.subi %c700_i32, %7 : i32
    %9 = tpu.iota {dimensions = array<i32: 1>} : vector<8x128xi32>
    %10 = vector.broadcast %8 : i32 to vector<8x128xi32>
    %11 = arith.cmpi slt, %9, %10 : vector<8x128xi32>
    %cst = arith.constant 0.000000e+00 : f32
    %12 = vector.broadcast %cst : f32 to vector<8x128xf32>
    %13 = arith.select %11, %3, %12 : vector<8x128xi1>, vector<8x128xf32>
    %14 = tpu.iota {dimensions = array<i32: 0>} : vector<128x32xi32>
    %15 = vector.broadcast %8 : i32 to vector<128x32xi32>
    %16 = arith.cmpi slt, %14, %15 : vector<128x32xi32>
    %cst_4 = arith.constant 0.000000e+00 : f32
    %17 = vector.broadcast %cst_4 : f32 to vector<128x32xf32>
    %18 = arith.select %16, %4, %17 : vector<128x32xi1>, vector<128x32xf32>
    %c0_5 = arith.constant 0 : index
    %c0_6 = arith.constant 0 : index
    %c0_7 = arith.constant 0 : index
    %19 = vector.load %arg4[%c0_5, %c0_6, %c0_7] : memref<1x8x32xf32, #tpu.memory_space<vmem>>, vector<1x8x32xf32>
    %20 = vector.shape_cast %19 : vector<1x8x32xf32> to vector<8x32xf32>
    %cst_8 = arith.constant dense<0.000000e+00> : vector<8x32xf32>
    %21 = tpu.matmul %13, %18, %cst_8 {dimension_numbers = #tpu.dot_dimension_numbers<[1], [0], [0], [1], [0, 0, 1, 1], [], []>} : vector<8x128xf32>, vector<128x32xf32>, vector<8x32xf32> -> vector<8x32xf32>
    %22 = arith.addf %20, %21 : vector<8x32xf32>
    %c0_9 = arith.constant 0 : index
    %c0_10 = arith.constant 0 : index
    %c0_11 = arith.constant 0 : index
    %23 = vector.load %arg4[%c0_9, %c0_10, %c0_11] : memref<1x8x32xf32, #tpu.memory_space<vmem>>, vector<1x8x32xf32>
    %24 = vector.shape_cast %23 : vector<1x8x32xf32> to vector<8x32xf32>
    %25 = vector.shape_cast %22 : vector<8x32xf32> to vector<1x8x32xf32>
    tpu.vector_store %arg4[%c0_9, %c0_10, %c0_11], %25 {strides = array<i32>} : memref<1x8x32xf32, #tpu.memory_space<vmem>>, vector<1x8x32xf32>,
    return
  }
  func.func @transform_0(%arg0: i32, %arg1: i32) -> (i32, i32) {
    %c3_i32 = arith.constant 3 : i32
    %0 = arith.muli %arg0, %c3_i32 : i32
    %1 = arith.addi %0, %arg1 : i32
    %c0_i32 = arith.constant 0 : i32
    %c0_i32_0 = arith.constant 0 : i32
    return %c0_i32, %1 : i32, i32
  }
  func.func @transform_1(%arg0: i32, %arg1: i32) -> (i32, i32) {
    %c3_i32 = arith.constant 3 : i32
    %0 = arith.muli %arg0, %c3_i32 : i32
    %1 = arith.addi %0, %arg1 : i32
    %c0_i32 = arith.constant 0 : i32
    %c0_i32_0 = arith.constant 0 : i32
    return %1, %c0_i32 : i32, i32
  }
  func.func @transform_2(%arg0: i32, %arg1: i32) -> (i32, i32, i32) {
    %c0_i32 = arith.constant 0 : i32
    %c0_i32_0 = arith.constant 0 : i32
    %c0_i32_1 = arith.constant 0 : i32
    return %arg0, %c0_i32, %c0_i32_0 : i32, i32, i32
  }
}

</mosaic_0001>

<bundles_post_ra>
// kernel: tpu_custom_call.1
= control target key start
LH: loop header
LB: loop body
LE: loop exit
PB: predicated region body
PF: predicated region fallthrough
CT: control target
= control target key end

     0   :  { %7 = vsyncpa [#allocation3], 0  ;;  %s993_s0 = inlined_call_operand.vmem [shape: f32[8,700], index: 0, kind: input, shape index: {}]   ;;  %s994_s1 = inlined_call_operand.vmem [shape: f32[700,32], index: 1, kind: input, shape index: {}]   ;;  %s995_s2 = inlined_call_operand.hbm [shape: f32[2,8,32], index: 2, kind: output, shape index: {}]  }
   0x1   :  { %9 = vsyncpa [#allocation3 + $0x1], 0  ;;  %s779_s9 = smov 0   ;;  %s781_s10 = smov 0  }
   0x2   :  { %s783_s11 = smov 0   ;;  %s785_s12 = smov 0  }
   0x3   :  { %s787_s13 = smov 0   ;;  %s789_s14 = smov 0  }
   0x4   :  { %s791_s15 = smov 0   ;;  %s793_s16 = smov 0  }
   0x5 LB: > { %s472_s17 = sadd.s32 4294967295, %s757_s16   ;;  %s473_s18 = sadd.s32 4294967294, %s757_s16   ;;  %s757_s16 = sphi %s793_s16, %s15_s16   ;;  %s753_s15 = sphi %s791_s15, %s1004_s15   ;;  %s749_s14 = sphi %s789_s14, %s1003_s14   ;;  %s745_s13 = sphi %s787_s13, %s1002_s13   ;;  %s741_s12 = sphi %s785_s12, %s1001_s12   ;;  %s737_s11 = sphi %s783_s11, %s1000_s11   ;;  %s733_s10 = sphi %s781_s10, %s999_s10   ;;  %s729_s9 = sphi %s779_s9, %s998_s9  }
   0x6   : > { %s24_s19 = sadd.s32 1, %s749_s14  ;;  %s27_s20 = sadd.s32 1, %s753_s15 }
   0x7   : > { %p25_p0 = scmp.ge.s32.totalorder %s24_s19, 3  ;;  %p104_p1 = scmp.ne.s32.totalorder %s737_s11, %s733_s10 }
   0x8   : > { %p105_p2 = scmp.eq.s32.totalorder %s472_s17, 5  ;;  %p110_p4 = scmp.ne.s32.totalorder %s733_s10, %s729_s9 }
   0x9   : > { %s1006_s19 = smov (%p25_p0, %s24_s19), 0  ;;  %s1008_s20 = smov (!%p25_p0, %s27_s20), %s753_s15 }
   0xa   : > { %p828_p3 = por %p105_p2, %p104_p1  ;;  %p29_p5 = scmp.ge.s32.totalorder %s1008_s20, 2 }
   0xb   : > { %p111_p6 = scmp.eq.s32.totalorder %s473_s18, 5  ;;  %p476_p7 = scmp.ge.s32.totalorder %s757_s16, 1 }
   0xc   : > { %p161_p8 = scmp.lt.s32.totalorder %s757_s16, 7  ;;  %s1010_s20 = smov (%p29_p5, %s1008_s20), 0 }
   0xd   : > { %p838_p9 = por %p111_p6, %p110_p4  ;;  %s91_s23 = ssub.s32 %s753_s15, %s1010_s20 }
   0xe   : > { %p162_p10 = pnand %p476_p7, %p161_p8  ;;  %s94_s24 = sadd.s32 1, %s737_s11 }
   0xf   : > { %p92_p11 = scmp.eq.s32.totalorder %s91_s23, 0  ;;  %s192_s26 = sand.u32 (!%p162_p10), 1, %s733_s10  }
  0x10   : > { %165 = sbr.rel (%p162_p10) target bundleno = 298 (0x12a), region = 28  ;;  %s477_s28 = sshll.u32 (!%p162_p10), %s192_s26, 3 }
  0x11   : > { %s846_s25 = scalar_select %p92_p11, %s737_s11, %s94_s24  }
  0x12   : > { %s195_s27 = smul.u32 (!%p162_p10), 3, %s745_s13  ;;  %s863_s24 = scalar_lea.vmem (!%p162_p10), [#allocation2], %s477_s28 }
  0x13   : > { %p481_p0 = scmp.ne.s32.totalorder (!%p162_p10), %s741_s12, 0 }
  0x14   : > { %s196_s29 = sadd.s32 (!%p162_p10), %s741_s12, %s195_s27 }
  0x15   : > { %p197_p12 = scmp.lt.s32.totalorder (!%p162_p10), %s196_s29, 5  ;;  %s479_s30 = sshll.u32 (!%p162_p10), %s196_s29, 4 }
  0x16   : > { %p210_p13 = scmp.lt.s32.totalorder (!%p162_p10), %s479_s30, 87 }
  0x17   : > { %s198_s3 = scalar_select %p197_p12, %s196_s29, 5 }
  0x18   : > { %s1012_s30 = smov (!%p210_p13, %s479_s30), 87  ;;  %224 = sbr.rel (%p481_p0) target bundleno = 31 (0x1f), region = 32 }
  0x19   : > { %s478_s4 = sshll.u32 %s198_s3, 3  ;;  %s480_s8 = sshll.u32 %s1012_s30, 3  ;;  %vm225_vm0 = vcmask (!%p481_p0), 261120   ;;  %v759_v0 = vmov (!%p481_p0), 0.0  }
  0x1a   : > { %s856_s7 = scalar_lea.vmem %s993_s0, %s478_s4  ;;  %s861_s23 = scalar_lea.vmem %s994_s1, %s480_s8  ;;  %226 = vst.msk [vmem:[%s863_s24] sm:$0xff] (!%p481_p0), %vm225_vm0, %v759_v0 }
  0x1f PF: > { %v228_v1 = vld [vmem:[%s861_s23] sm:$0xff]  ;;  %v229_v2 = vld [vmem:[%s861_s23 + $0x8] sm:$0xff]  ;;  %s482_s27 = sshll.u32 %s196_s29, 7  ;;  %v248_v3 = vlaneseq  ;;  %v760_v4 = vmov 0.0|0.0   ;;  %vm761_vm1 = vmmov 0   ;;  %v762_v7 = vmov 0.0  }
  0x20   : > { %556 = vmatprep.subr.bf16.mxu0 %v760_v4  ;;  %s247_s28 = ssub.s32 700, %s482_s27  ;;  %553 = vmatprep.mubr.msk.f32.mxu0 %vm761_vm1, %v762_v7  ;;  %v557_v8 = vpack.c.bf16 %v229_v2, %v228_v1  ;;  %v230_v12 = vld [vmem:[%s861_s23 + $0x10] sm:$0xff]  ;;  %v231_v13 = vld [vmem:[%s861_s23 + $0x18] sm:$0xff]  ;;  %v232_v17 = vld [vmem:[%s861_s23 + $0x20] sm:$0xff]  ;;  %s501_s12 = sshll.u32 %s745_s13, 7 }
  0x21   : > { %v870_v5 = vstv %s247_s28  ;;  %v873_v6 = vshrl.u32 %v248_v3, 7  ;;  %v561_v16 = vpack.c.bf16 %v231_v13, %v230_v12  ;;  %v233_v18 = vld [vmem:[%s861_s23 + $0x28] sm:$0xff]  ;;  %v234_v22 = vld [vmem:[%s861_s23 + $0x30] sm:$0xff]  ;;  %v235_v23 = vld [vmem:[%s861_s23 + $0x38] sm:$0xff]  ;;  %v249_v45 = vand.u32 127, %v248_v3  ;;  %s390_s29 = sshll.u32 %s863_s24, 4  ;;  %s937_s4 = scalar_lea.hbm %s995_s2, %s501_s12  ;;  %s939_s29 = int_to_ptr.vmem [resolvable:$true] %s390_s29 }
  0x22   : > { %v565_v21 = vpack.c.bf16 %v233_v18, %v232_v17  ;;  %v569_v26 = vpack.c.bf16 %v235_v23, %v234_v22  ;;  %v236_v27 = vld [vmem:[%s861_s23 + $0x40] sm:$0xff]  ;;  %v237_v28 = vld [vmem:[%s861_s23 + $0x48] sm:$0xff]  ;;  %v238_v32 = vld [vmem:[%s861_s23 + $0x50] sm:$0xff]  ;;  %s377_s5 = scalar_lea.sflag [#allocation3], %s192_s26  ;;  %s663_s6 = scalar_lea.vmem %s939_s29, 128 }
  0x23   : > { %v255_v9 = vadd.s32 8, %v873_v6  ;;  %vm270_vm2 = vcmp.lt.s32.totalorder %v873_v6, %v870_v5  ;;  %v256_v10 = vadd.s32 16, %v873_v6  ;;  %v257_v11 = vadd.s32 24, %v873_v6  ;;  %v239_v33 = vld [vmem:[%s861_s23 + $0x58] sm:$0xff]  ;;  %v240_v37 = vld [vmem:[%s861_s23 + $0x60] sm:$0xff]  ;;  %v241_v38 = vld [vmem:[%s861_s23 + $0x68] sm:$0xff]  ;;  %p664_p1 = scmp.ne.s32.totalorder %s939_s29, %s663_s6 }
  0x24   : > { %v258_v14 = vadd.s32 32, %v873_v6  ;;  %v259_v15 = vadd.s32 40, %v873_v6  ;;  %v260_v19 = vadd.s32 48, %v873_v6  ;;  %v261_v20 = vadd.s32 56, %v873_v6  ;;  %v242_v42 = vld [vmem:[%s861_s23 + $0x70] sm:$0xff]  ;;  %v243_v43 = vld [vmem:[%s861_s23 + $0x78] sm:$0xff] }
  0x25   : > { %vm271_vm3 = vcmp.lt.s32.totalorder %v255_v9, %v870_v5  ;;  %vm272_vm4 = vcmp.lt.s32.totalorder %v256_v10, %v870_v5  ;;  %vm273_vm5 = vcmp.lt.s32.totalorder %v257_v11, %v870_v5  ;;  %v262_v24 = vadd.s32 64, %v873_v6  ;;  %v227_v46 = vld [vmem:[%s856_s7] sm:$0xff]  ;;  %p665_p2 = pnand %p664_p1, %p828_p3  ;;  %s763_s13 = smov [#allocation2]  }
  0x26   : > { %vm558_vm6 = vmpackc.low %vm271_vm3, %vm270_vm2  ;;  %vm274_vm8 = vcmp.lt.s32.totalorder %v258_v14, %v870_v5  ;;  %vm275_vm9 = vcmp.lt.s32.totalorder %v259_v15, %v870_v5  ;;  %vm276_vm11 = vcmp.lt.s32.totalorder %v260_v19, %v870_v5  ;;  %vm277_vm12 = vcmp.lt.s32.totalorder %v261_v20, %v870_v5  ;;  %v302_v47 = vld [vmem:[%s863_s24] sm:$0xff]  ;;  %s667_s7 = sshll.u32 %s763_s13, 4  ;;  %s668_s7 = int_to_ptr.vmem [resolvable:$false] %s667_s7 }
  0x27   : > { %559 = vmatpush3.bf16.msk.msra.mxu0 %vm558_vm6, %v557_v8  ;;  %vm562_vm7 = vmpackc.low %vm273_vm5, %vm272_vm4  ;;  %v263_v25 = vadd.s32 72, %v873_v6  ;;  %vm278_vm14 = vcmp.lt.s32.totalorder %v262_v24, %v870_v5  ;;  %v264_v29 = vadd.s32 80, %v873_v6  ;;  %v265_v30 = vadd.s32 88, %v873_v6  ;;  %p666_p4 = pneg %p665_p2  ;;  %s669_s8 = scalar_lea.vmem %s668_s7, 256 }
  0x28   : > { %560 = vmatprep.subr.bf16.mxu0 %v760_v4  ;;  %vm566_vm10 = vmpackc.low %vm275_vm9, %vm274_vm8  ;;  %v573_v31 = vpack.c.bf16 %v237_v28, %v236_v27  ;;  %v266_v34 = vadd.s32 96, %v873_v6  ;;  %v267_v35 = vadd.s32 104, %v873_v6  ;;  %v577_v36 = vpack.c.bf16 %v239_v33, %v238_v32  ;;  %p670_p5 = scmp.lt.s32.totalorder %s939_s29, %s668_s7  ;;  %p671_p6 = scmp.lt.s32.totalorder %s669_s8, %s663_s6 }
  0x29   : > { %vm570_vm13 = vmpackc.low %vm277_vm12, %vm276_vm11  ;;  %vm279_vm15 = vcmp.lt.s32.totalorder %v263_v25, %v870_v5  ;;  %vm280_vm1 = vcmp.lt.s32.totalorder %v264_v29, %v870_v5  ;;  %vm281_vm2 = vcmp.lt.s32.totalorder %v265_v30, %v870_v5  ;;  %v268_v39 = vadd.s32 112, %v873_v6 }
  0x2a   : > { %vm574_vm0 = vmpackc.low %vm279_vm15, %vm278_vm14  ;;  %vm282_vm4 = vcmp.lt.s32.totalorder %v266_v34, %v870_v5  ;;  %vm283_vm5 = vcmp.lt.s32.totalorder %v267_v35, %v870_v5  ;;  %v269_v40 = vadd.s32 120, %v873_v6  ;;  %v581_v41 = vpack.c.bf16 %v241_v38, %v240_v37  ;;  %p672_p7 = por %p671_p6, %p670_p5 }
  0x2b   : > { %563 = vmatpush3.bf16.msk.msra.mxu0 %vm562_vm7, %v561_v16  ;;  %vm578_vm3 = vmpackc.low %vm281_vm2, %vm280_vm1  ;;  %vm284_vm7 = vcmp.lt.s32.totalorder %v268_v39, %v870_v5  ;;  %v585_v44 = vpack.c.bf16 %v243_v43, %v242_v42  ;;  %vm374_vm11 = vcmask 261120  }
  0x2c   : > { %564 = vmatprep.subr.bf16.mxu0 %v760_v4  ;;  %vm582_vm6 = vmpackc.low %vm283_vm5, %vm282_vm4  ;;  %vm285_vm8 = vcmp.lt.s32.totalorder %v269_v40, %v870_v5  ;;  %p673_p8 = pnand %p672_p7, %p666_p4 }
  0x2d   : > { %vm586_vm9 = vmpackc.low %vm285_vm8, %vm284_vm7 }
  0x2f   : > { %567 = vmatpush3.bf16.msk.msra.mxu0 %vm566_vm10, %v565_v21  ;;  %vm251_vm10 = vcmp.lt.s32.totalorder %v249_v45, %v870_v5 }
  0x30   : > { %568 = vmatprep.subr.bf16.mxu0 %v760_v4 }
  0x33   : > { %571 = vmatpush3.bf16.msk.msra.mxu0 %vm570_vm13, %v569_v26 }
  0x34   : > { %572 = vmatprep.subr.bf16.mxu0 %v760_v4 }
  0x37   : > { %575 = vmatpush3.bf16.msk.msra.mxu0 %vm574_vm0, %v573_v31 }
  0x38   : > { %576 = vmatprep.subr.bf16.mxu0 %v760_v4 }
  0x3b   : > { %579 = vmatpush3.bf16.msk.msra.mxu0 %vm578_vm3, %v577_v36 }
  0x3c   : > { %580 = vmatprep.subr.bf16.mxu0 %v760_v4 }
  0x3f   : > { %583 = vmatpush3.bf16.msk.msra.mxu0 %vm582_vm6, %v581_v41 }
  0x40   : > { %584 = vmatprep.subr.bf16.mxu0 %v760_v4 }
  0x43   : > { %587 = vmatpush3.bf16.msk.msra.mxu0 %vm586_vm9, %v585_v44 }
  0x46   : > { %554 = vmatmul.mubr.msk.f32.vlgmr.msra.gmra.mrb[0].mxu0 %vm251_vm10, %v227_v46 }
 0x119   : > { %v369_v48 = vpop.f32.mrb[0].mxu0 }
 0x11a   : > { %v373_v49 = vadd.f32 %v369_v48, %v302_v47  ;;  %v555_v50 = vpop.f32.mrb[1].mxu0 }
 0x11c   : > { %375 = vst.msk [vmem:[%s863_s24] sm:$0xff] %vm374_vm11, %v373_v49 }
 0x11d   : > { %676 = shalt.err (!%p673_p8)
}
 0x11e   : > { %s677_s26 = scalar_lea.hbm %s937_s4, 128  ;;  %s681_s23 = scalar_lea.hbm %s995_s2, 256 }
 0x11f   : > { %p678_p10 = scmp.ne.s32.totalorder %s937_s4, %s677_s26  ;;  %p682_p13 = scmp.lt.u32.totalorder %s937_s4, %s995_s2 }
 0x120   : > { %p683_p0 = scmp.lt.u32.totalorder %s681_s23, %s677_s26  ;;  %p685_p2 = scmp.lt.u32.totalorder %s677_s26, %s937_s4 }
 0x121   : > { %p679_p11 = pnand %p678_p10, %p828_p3 }
 0x122   : > { %p684_p1 = por %p683_p0, %p682_p13 }
 0x123   : > { %p680_p12 = pneg %p679_p11 }
 0x124   : > { %p686_p4 = por %p685_p2, %p684_p1 }
 0x126   : > { %p687_p5 = pnand %p686_p4, %p680_p12 }
 0x128   : > { %690 = shalt.err (!%p687_p5)
}
 0x129   : > { %588 = dma.vmem_to_hbm [thread:$0]  (%p828_p3), %s939_s29, 128, %s937_s4, %s377_s5  }
 0x12a PF: > { %p594_p6 = scmp.ge.s32.totalorder %s757_s16, 2  ;;  %s402_s28 = sand.u32 1, %s729_s9  }
 0x12b   : > { %s403_s12 = scalar_lea.sflag [#allocation3], %s402_s28 }
 0x12c   : > { %p591_p7 = pnand %p594_p6, %p838_p9 }
 0x12e   : > { %724 = dma.done.wait (!%p591_p7), %s403_s12, 128  }
 0x12f   : > { %726 = vsyncadd (!%p591_p7), %s403_s12, 4294967168  ;;  %s15_s16 = sadd.s32 1, %s757_s16   ;;  %s998_s9 = smov %s733_s10 }
 0x130   : > { %p12_p8 = scmp.ge.s32.totalorder %s15_s16, 8   ;;  %s999_s10 = smov %s737_s11 }
 0x131   : > { %s1000_s11 = smov %s846_s25  ;;  %s1001_s12 = smov %s749_s14 }
 0x132   : > { %s1002_s13 = smov %s753_s15  ;;  %s1003_s14 = smov %s1006_s19 }
 0x133   : > { %s1004_s15 = smov %s1010_s20  ;;  %14 = sbr.rel (!%p12_p8) target bundleno = 5 (0x5), region = 70 }
 0x13a   :  { %408 = vsyncpa [#allocation3], 1 }
 0x13b   :  { %410 = vsyncpa [#allocation3 + $0x1], 1 }

</bundles_post_ra>
